<compile_context>
chip_gen: v7x
topology: tpu7x:2x2x1
jax: 0.10.0
libtpu: 0.0.40
codegen_flags: <defaults>
</compile_context>

<pallas_src>
import jax
import jax.numpy as jnp
from jax.experimental import pallas as pl
from jax.experimental.pallas import tpu as pltpu


# ----------------------------------------------------------------------------
# Pallas kernel: `fb` frequency bins per grid step (fb == F by default, i.e.
# a single step).  Complex matmul via Gauss's 3 real MXU matmuls:
#   (Tr + i Ti)(Xr + i Xi):  p1 = Tr Xr, p2 = Ti Xi, p3 = (Tr+Ti)(Xr+Xi)
#   real = p1 - p2,  imag = p3 - p1 - p2
# ----------------------------------------------------------------------------
def _focus_matmul_kernel(tr_ref, ti_ref, xr_ref, xi_ref, yr_ref, yi_ref):
    fb = tr_ref.shape[0]            # static Python int -> loop fully unrolled

    ys_r = []
    ys_i = []
    for f in range(fb):
        tr = tr_ref[f]              # (M, M) f32
        ti = ti_ref[f]
        xr = xr_ref[f]              # (M, N) f32
        xi = xi_ref[f]
        p1 = jnp.dot(tr, xr, preferred_element_type=jnp.float32)
        p2 = jnp.dot(ti, xi, preferred_element_type=jnp.float32)
        p3 = jnp.dot(tr + ti, xr + xi, preferred_element_type=jnp.float32)
        ys_r.append(p1 - p2)
        ys_i.append(p3 - p1 - p2)

    # Lane-dense stores: concatenate the per-frequency (M, N) tiles along the
    # lane axis so each store covers fb*N (>=128) lanes instead of N=32.
    yr_ref[...] = jnp.concatenate(ys_r, axis=-1)
    yi_ref[...] = jnp.concatenate(ys_i, axis=-1)


def focusing_forward_planar(tr, ti, xr, xi, fb=None):
    """Batched complex matmul on real/imag planes.

    Args:
      tr, ti: (F, M, M) float32 real/imag parts of the focusing transforms.
      xr, xi: (F, M, N) float32 real/imag parts of the snapshots.
      fb:     frequencies per grid step (default: all of them -> single step).
    Returns:
      yr, yi: (M, F*N) float32 lane-dense result slabs; column block f holds
              the (M, N) result for frequency f.
    """
    F, M, _ = tr.shape
    N = xr.shape[-1]
    if fb is None:
        fb = F
    assert F % fb == 0, "fb must divide F"
    # Output block last dim must be a multiple of 128 lanes (or the full dim).
    assert fb == F or (fb * N) % 128 == 0, "pick fb so fb*N is lane-aligned"

    t_spec = pl.BlockSpec((fb, M, M), lambda g: (g, 0, 0))
    x_spec = pl.BlockSpec((fb, M, N), lambda g: (g, 0, 0))
    y_spec = pl.BlockSpec((M, fb * N), lambda g: (0, g))

    yr, yi = pl.pallas_call(
        _focus_matmul_kernel,
        out_shape=(jax.ShapeDtypeStruct((M, F * N), jnp.float32),
                   jax.ShapeDtypeStruct((M, F * N), jnp.float32)),
        grid=(F // fb,),
        in_specs=[t_spec, t_spec, x_spec, x_spec],
        out_specs=(y_spec, y_spec),
        compiler_params=pltpu.CompilerParams(
            dimension_semantics=("parallel",)),   # sharded across TCs on v7x
    )(tr, ti, xr, xi)
    return yr, yi


def focusing_forward_pallas(Tf, x, fb=None):
    """Applies xtilde = Tf @ x (batched over frequency) with a Pallas kernel.

    Args:
      Tf: complex64 array of shape (F, M, M)  — focusing transforms.
      x : complex64 array of shape (F, M, N)  — narrowband snapshots.
    Returns:
      complex64 array of shape (F, M, N).
    """
    F, M, _ = Tf.shape
    N = x.shape[-1]

    # NOTE: if the surrounding model keeps planar real/imag tensors, call
    # focusing_forward_planar directly and skip these de/re-interleave passes.
    tr = jnp.real(Tf).astype(jnp.float32)
    ti = jnp.imag(Tf).astype(jnp.float32)
    xr = jnp.real(x).astype(jnp.float32)
    xi = jnp.imag(x).astype(jnp.float32)

    yr, yi = focusing_forward_planar(tr, ti, xr, xi, fb=fb)

    # (M, F*N) lane-dense slabs -> (F, M, N); fuses with complex recombination.
    yr = jnp.transpose(yr.reshape(M, F, N), (1, 0, 2))
    yi = jnp.transpose(yi.reshape(M, F, N), (1, 0, 2))
    return (yr + 1j * yi).astype(jnp.complex64)


# ----------------------------------------------------------------------------
# Plain-JAX "glue" reproducing the module's transform construction utilities
# (init_parameters / get_all_transforms are stubs in the base class, so we
#  synthesize Tf___ = D___ @ R___ from the two documented utility functions).
# ----------------------------------------------------------------------------
def get_diagonal_from_weights(Dexp):
    # Dexp: (M, F) real weights.  Returns (F, M, M) complex diagonal matrices.
    d = jnp.exp(-1j * Dexp.astype(jnp.complex64)).T          # (F, M)
    return jax.vmap(jnp.diag)(d)                              # (F, M, M)


def get_householder_from_weights(WR, M, F):
    # WR: (M, F) real weights. Returns (F, M, M) Householder matrices.
    r = WR.T / jnp.linalg.norm(WR.T, ord=2, axis=1, keepdims=True)  # (F, M)
    r = r[..., None].astype(jnp.complex64)                          # (F, M, 1)
    eye = jnp.broadcast_to(jnp.eye(M, dtype=jnp.complex64), (F, M, M))
    return eye - 2.0 * (r @ jnp.conjugate(jnp.swapaxes(r, -1, -2)))


def get_all_transforms(Dexp, WR, M, F):
    D = get_diagonal_from_weights(Dexp)            # (F, M, M)
    R = get_householder_from_weights(WR, M, F)     # (F, M, M)
    return D @ R                                   # (F, M, M)


# ----------------------------------------------------------------------------
if __name__ == "__main__":
    # Small shapes consistent with the module: M array elements, F freqs,
    # N snapshots.
    M, F, N = 16, 8, 32

    key = jax.random.PRNGKey(0)
    k1, k2, k3, k4 = jax.random.split(key, 4)

    # Deterministic synthetic parameters (shapes implied by the utilities).
    Dexp = jax.random.uniform(k1, (M, F), dtype=jnp.float32) * 2.0 * jnp.pi
    WR = jax.random.normal(k2, (M, F), dtype=jnp.float32)

    # Complex input data x: (F, M, N)
    x = (jax.random.normal(k3, (F, M, N), dtype=jnp.float32)
         + 1j * jax.random.normal(k4, (F, M, N), dtype=jnp.float32)
         ).astype(jnp.complex64)

    Tf = get_all_transforms(Dexp, WR, M, F)        # (F, M, M) complex64

    # Pallas forward (jit so the split / recombine / transpose plumbing fuses).
    fwd = jax.jit(focusing_forward_pallas)
    xtilde = jax.block_until_ready(fwd(Tf, x))

    # Reference (pure JAX) for correctness check.
    ref = jnp.einsum("fij,fjn->fin", Tf, x)
    err = float(jnp.max(jnp.abs(xtilde - ref)))
    assert err < 1e-3, f"max abs error {err}"

    print("KERNEL_OK")
</pallas_src>

<mosaic_0001>
module attributes {stable_mosaic.version = 11 : i64} {
  func.func @_focus_matmul_kernel(%arg0: i32, %arg1: memref<8x16x16xf32, #tpu.memory_space<vmem>>, %arg2: memref<8x16x16xf32, #tpu.memory_space<vmem>>, %arg3: memref<8x16x32xf32, #tpu.memory_space<vmem>>, %arg4: memref<8x16x32xf32, #tpu.memory_space<vmem>>, %arg5: memref<16x256xf32, #tpu.memory_space<vmem>>, %arg6: memref<16x256xf32, #tpu.memory_space<vmem>>) attributes {dimension_semantics = [#tpu.dimension_semantics<parallel>], iteration_bounds = array<i64: 1>, scalar_prefetch = 0 : i64, scratch_operands = 0 : i64, tpu.core_type = #tpu.core_type<tc>, window_params = [{transform_indices = @transform_0, window_bounds = array<i64: 8, 16, 16>}, {transform_indices = @transform_1, window_bounds = array<i64: 8, 16, 16>}, {transform_indices = @transform_2, window_bounds = array<i64: 8, 16, 32>}, {transform_indices = @transform_3, window_bounds = array<i64: 8, 16, 32>}, {transform_indices = @transform_4, window_bounds = array<i64: 16, 256>}, {transform_indices = @transform_5, window_bounds = array<i64: 16, 256>}]} {
    %c0 = arith.constant 0 : index
    %c0_0 = arith.constant 0 : index
    %c0_1 = arith.constant 0 : index
    %0 = vector.load %arg1[%c0, %c0_0, %c0_1] : memref<8x16x16xf32, #tpu.memory_space<vmem>>, vector<1x16x16xf32>
    %1 = vector.shape_cast %0 : vector<1x16x16xf32> to vector<16x16xf32>
    %c0_2 = arith.constant 0 : index
    %c0_3 = arith.constant 0 : index
    %c0_4 = arith.constant 0 : index
    %2 = vector.load %arg2[%c0_2, %c0_3, %c0_4] : memref<8x16x16xf32, #tpu.memory_space<vmem>>, vector<1x16x16xf32>
    %3 = vector.shape_cast %2 : vector<1x16x16xf32> to vector<16x16xf32>
    %c0_5 = arith.constant 0 : index
    %c0_6 = arith.constant 0 : index
    %c0_7 = arith.constant 0 : index
    %4 = vector.load %arg3[%c0_5, %c0_6, %c0_7] : memref<8x16x32xf32, #tpu.memory_space<vmem>>, vector<1x16x32xf32>
    %5 = vector.shape_cast %4 : vector<1x16x32xf32> to vector<16x32xf32>
    %c0_8 = arith.constant 0 : index
    %c0_9 = arith.constant 0 : index
    %c0_10 = arith.constant 0 : index
    %6 = vector.load %arg4[%c0_8, %c0_9, %c0_10] : memref<8x16x32xf32, #tpu.memory_space<vmem>>, vector<1x16x32xf32>
    %7 = vector.shape_cast %6 : vector<1x16x32xf32> to vector<16x32xf32>
    %cst = arith.constant dense<0.000000e+00> : vector<16x32xf32>
    %8 = tpu.matmul %1, %5, %cst {dimension_numbers = #tpu.dot_dimension_numbers<[1], [0], [0], [1], [0, 0, 1, 1], [], []>} : vector<16x16xf32>, vector<16x32xf32>, vector<16x32xf32> -> vector<16x32xf32>
    %cst_11 = arith.constant dense<0.000000e+00> : vector<16x32xf32>
    %9 = tpu.matmul %3, %7, %cst_11 {dimension_numbers = #tpu.dot_dimension_numbers<[1], [0], [0], [1], [0, 0, 1, 1], [], []>} : vector<16x16xf32>, vector<16x32xf32>, vector<16x32xf32> -> vector<16x32xf32>
    %10 = arith.addf %1, %3 : vector<16x16xf32>
    %11 = arith.addf %5, %7 : vector<16x32xf32>
    %cst_12 = arith.constant dense<0.000000e+00> : vector<16x32xf32>
    %12 = tpu.matmul %10, %11, %cst_12 {dimension_numbers = #tpu.dot_dimension_numbers<[1], [0], [0], [1], [0, 0, 1, 1], [], []>} : vector<16x16xf32>, vector<16x32xf32>, vector<16x32xf32> -> vector<16x32xf32>
    %13 = arith.subf %8, %9 : vector<16x32xf32>
    %14 = arith.subf %12, %8 : vector<16x32xf32>
    %15 = arith.subf %14, %9 : vector<16x32xf32>
    %c1 = arith.constant 1 : index
    %c0_13 = arith.constant 0 : index
    %c0_14 = arith.constant 0 : index
    %16 = vector.load %arg1[%c1, %c0_13, %c0_14] : memref<8x16x16xf32, #tpu.memory_space<vmem>>, vector<1x16x16xf32>
    %17 = vector.shape_cast %16 : vector<1x16x16xf32> to vector<16x16xf32>
    %c1_15 = arith.constant 1 : index
    %c0_16 = arith.constant 0 : index
    %c0_17 = arith.constant 0 : index
    %18 = vector.load %arg2[%c1_15, %c0_16, %c0_17] : memref<8x16x16xf32, #tpu.memory_space<vmem>>, vector<1x16x16xf32>
    %19 = vector.shape_cast %18 : vector<1x16x16xf32> to vector<16x16xf32>
    %c1_18 = arith.constant 1 : index
    %c0_19 = arith.constant 0 : index
    %c0_20 = arith.constant 0 : index
    %20 = vector.load %arg3[%c1_18, %c0_19, %c0_20] : memref<8x16x32xf32, #tpu.memory_space<vmem>>, vector<1x16x32xf32>
    %21 = vector.shape_cast %20 : vector<1x16x32xf32> to vector<16x32xf32>
    %c1_21 = arith.constant 1 : index
    %c0_22 = arith.constant 0 : index
    %c0_23 = arith.constant 0 : index
    %22 = vector.load %arg4[%c1_21, %c0_22, %c0_23] : memref<8x16x32xf32, #tpu.memory_space<vmem>>, vector<1x16x32xf32>
    %23 = vector.shape_cast %22 : vector<1x16x32xf32> to vector<16x32xf32>
    %cst_24 = arith.constant dense<0.000000e+00> : vector<16x32xf32>
    %24 = tpu.matmul %17, %21, %cst_24 {dimension_numbers = #tpu.dot_dimension_numbers<[1], [0], [0], [1], [0, 0, 1, 1], [], []>} : vector<16x16xf32>, vector<16x32xf32>, vector<16x32xf32> -> vector<16x32xf32>
    %cst_25 = arith.constant dense<0.000000e+00> : vector<16x32xf32>
    %25 = tpu.matmul %19, %23, %cst_25 {dimension_numbers = #tpu.dot_dimension_numbers<[1], [0], [0], [1], [0, 0, 1, 1], [], []>} : vector<16x16xf32>, vector<16x32xf32>, vector<16x32xf32> -> vector<16x32xf32>
    %26 = arith.addf %17, %19 : vector<16x16xf32>
    %27 = arith.addf %21, %23 : vector<16x32xf32>
    %cst_26 = arith.constant dense<0.000000e+00> : vector<16x32xf32>
    %28 = tpu.matmul %26, %27, %cst_26 {dimension_numbers = #tpu.dot_dimension_numbers<[1], [0], [0], [1], [0, 0, 1, 1], [], []>} : vector<16x16xf32>, vector<16x32xf32>, vector<16x32xf32> -> vector<16x32xf32>
    %29 = arith.subf %24, %25 : vector<16x32xf32>
    %30 = arith.subf %28, %24 : vector<16x32xf32>
    %31 = arith.subf %30, %25 : vector<16x32xf32>
    %c2 = arith.constant 2 : index
    %c0_27 = arith.constant 0 : index
    %c0_28 = arith.constant 0 : index
    %32 = vector.load %arg1[%c2, %c0_27, %c0_28] : memref<8x16x16xf32, #tpu.memory_space<vmem>>, vector<1x16x16xf32>
    %33 = vector.shape_cast %32 : vector<1x16x16xf32> to vector<16x16xf32>
    %c2_29 = arith.constant 2 : index
    %c0_30 = arith.constant 0 : index
    %c0_31 = arith.constant 0 : index
    %34 = vector.load %arg2[%c2_29, %c0_30, %c0_31] : memref<8x16x16xf32, #tpu.memory_space<vmem>>, vector<1x16x16xf32>
    %35 = vector.shape_cast %34 : vector<1x16x16xf32> to vector<16x16xf32>
    %c2_32 = arith.constant 2 : index
    %c0_33 = arith.constant 0 : index
    %c0_34 = arith.constant 0 : index
    %36 = vector.load %arg3[%c2_32, %c0_33, %c0_34] : memref<8x16x32xf32, #tpu.memory_space<vmem>>, vector<1x16x32xf32>
    %37 = vector.shape_cast %36 : vector<1x16x32xf32> to vector<16x32xf32>
    %c2_35 = arith.constant 2 : index
    %c0_36 = arith.constant 0 : index
    %c0_37 = arith.constant 0 : index
    %38 = vector.load %arg4[%c2_35, %c0_36, %c0_37] : memref<8x16x32xf32, #tpu.memory_space<vmem>>, vector<1x16x32xf32>
    %39 = vector.shape_cast %38 : vector<1x16x32xf32> to vector<16x32xf32>
    %cst_38 = arith.constant dense<0.000000e+00> : vector<16x32xf32>
    %40 = tpu.matmul %33, %37, %cst_38 {dimension_numbers = #tpu.dot_dimension_numbers<[1], [0], [0], [1], [0, 0, 1, 1], [], []>} : vector<16x16xf32>, vector<16x32xf32>, vector<16x32xf32> -> vector<16x32xf32>
    %cst_39 = arith.constant dense<0.000000e+00> : vector<16x32xf32>
    %41 = tpu.matmul %35, %39, %cst_39 {dimension_numbers = #tpu.dot_dimension_numbers<[1], [0], [0], [1], [0, 0, 1, 1], [], []>} : vector<16x16xf32>, vector<16x32xf32>, vector<16x32xf32> -> vector<16x32xf32>
    %42 = arith.addf %33, %35 : vector<16x16xf32>
    %43 = arith.addf %37, %39 : vector<16x32xf32>
    %cst_40 = arith.constant dense<0.000000e+00> : vector<16x32xf32>
    %44 = tpu.matmul %42, %43, %cst_40 {dimension_numbers = #tpu.dot_dimension_numbers<[1], [0], [0], [1], [0, 0, 1, 1], [], []>} : vector<16x16xf32>, vector<16x32xf32>, vector<16x32xf32> -> vector<16x32xf32>
    %45 = arith.subf %40, %41 : vector<16x32xf32>
    %46 = arith.subf %44, %40 : vector<16x32xf32>
    %47 = arith.subf %46, %41 : vector<16x32xf32>
    %c3 = arith.constant 3 : index
    %c0_41 = arith.constant 0 : index
    %c0_42 = arith.constant 0 : index
    %48 = vector.load %arg1[%c3, %c0_41, %c0_42] : memref<8x16x16xf32, #tpu.memory_space<vmem>>, vector<1x16x16xf32>
    %49 = vector.shape_cast %48 : vector<1x16x16xf32> to vector<16x16xf32>
    %c3_43 = arith.constant 3 : index
    %c0_44 = arith.constant 0 : index
    %c0_45 = arith.constant 0 : index
    %50 = vector.load %arg2[%c3_43, %c0_44, %c0_45] : memref<8x16x16xf32, #tpu.memory_space<vmem>>, vector<1x16x16xf32>
    %51 = vector.shape_cast %50 : vector<1x16x16xf32> to vector<16x16xf32>
    %c3_46 = arith.constant 3 : index
    %c0_47 = arith.constant 0 : index
    %c0_48 = arith.constant 0 : index
    %52 = vector.load %arg3[%c3_46, %c0_47, %c0_48] : memref<8x16x32xf32, #tpu.memory_space<vmem>>, vector<1x16x32xf32>
    %53 = vector.shape_cast %52 : vector<1x16x32xf32> to vector<16x32xf32>
    %c3_49 = arith.constant 3 : index
    %c0_50 = arith.constant 0 : index
    %c0_51 = arith.constant 0 : index
    %54 = vector.load %arg4[%c3_49, %c0_50, %c0_51] : memref<8x16x32xf32, #tpu.memory_space<vmem>>, vector<1x16x32xf32>
    %55 = vector.shape_cast %54 : vector<1x16x32xf32> to vector<16x32xf32>
    %cst_52 = arith.constant dense<0.000000e+00> : vector<16x32xf32>
    %56 = tpu.matmul %49, %53, %cst_52 {dimension_numbers = #tpu.dot_dimension_numbers<[1], [0], [0], [1], [0, 0, 1, 1], [], []>} : vector<16x16xf32>, vector<16x32xf32>, vector<16x32xf32> -> vector<16x32xf32>
    %cst_53 = arith.constant dense<0.000000e+00> : vector<16x32xf32>
    %57 = tpu.matmul %51, %55, %cst_53 {dimension_numbers = #tpu.dot_dimension_numbers<[1], [0], [0], [1], [0, 0, 1, 1], [], []>} : vector<16x16xf32>, vector<16x32xf32>, vector<16x32xf32> -> vector<16x32xf32>
    %58 = arith.addf %49, %51 : vector<16x16xf32>
    %59 = arith.addf %53, %55 : vector<16x32xf32>
    %cst_54 = arith.constant dense<0.000000e+00> : vector<16x32xf32>
    %60 = tpu.matmul %58, %59, %cst_54 {dimension_numbers = #tpu.dot_dimension_numbers<[1], [0], [0], [1], [0, 0, 1, 1], [], []>} : vector<16x16xf32>, vector<16x32xf32>, vector<16x32xf32> -> vector<16x32xf32>
    %61 = arith.subf %56, %57 : vector<16x32xf32>
    %62 = arith.subf %60, %56 : vector<16x32xf32>
    %63 = arith.subf %62, %57 : vector<16x32xf32>
    %c4 = arith.constant 4 : index
    %c0_55 = arith.constant 0 : index
    %c0_56 = arith.constant 0 : index
    %64 = vector.load %arg1[%c4, %c0_55, %c0_56] : memref<8x16x16xf32, #tpu.memory_space<vmem>>, vector<1x16x16xf32>
    %65 = vector.shape_cast %64 : vector<1x16x16xf32> to vector<16x16xf32>
    %c4_57 = arith.constant 4 : index
    %c0_58 = arith.constant 0 : index
    %c0_59 = arith.constant 0 : index
    %66 = vector.load %arg2[%c4_57, %c0_58, %c0_59] : memref<8x16x16xf32, #tpu.memory_space<vmem>>, vector<1x16x16xf32>
    %67 = vector.shape_cast %66 : vector<1x16x16xf32> to vector<16x16xf32>
    %c4_60 = arith.constant 4 : index
    %c0_61 = arith.constant 0 : index
    %c0_62 = arith.constant 0 : index
    %68 = vector.load %arg3[%c4_60, %c0_61, %c0_62] : memref<8x16x32xf32, #tpu.memory_space<vmem>>, vector<1x16x32xf32>
    %69 = vector.shape_cast %68 : vector<1x16x32xf32> to vector<16x32xf32>
    %c4_63 = arith.constant 4 : index
    %c0_64 = arith.constant 0 : index
    %c0_65 = arith.constant 0 : index
    %70 = vector.load %arg4[%c4_63, %c0_64, %c0_65] : memref<8x16x32xf32, #tpu.memory_space<vmem>>, vector<1x16x32xf32>
    %71 = vector.shape_cast %70 : vector<1x16x32xf32> to vector<16x32xf32>
    %cst_66 = arith.constant dense<0.000000e+00> : vector<16x32xf32>
    %72 = tpu.matmul %65, %69, %cst_66 {dimension_numbers = #tpu.dot_dimension_numbers<[1], [0], [0], [1], [0, 0, 1, 1], [], []>} : vector<16x16xf32>, vector<16x32xf32>, vector<16x32xf32> -> vector<16x32xf32>
    %cst_67 = arith.constant dense<0.000000e+00> : vector<16x32xf32>
    %73 = tpu.matmul %67, %71, %cst_67 {dimension_numbers = #tpu.dot_dimension_numbers<[1], [0], [0], [1], [0, 0, 1, 1], [], []>} : vector<16x16xf32>, vector<16x32xf32>, vector<16x32xf32> -> vector<16x32xf32>
    %74 = arith.addf %65, %67 : vector<16x16xf32>
    %75 = arith.addf %69, %71 : vector<16x32xf32>
    %cst_68 = arith.constant dense<0.000000e+00> : vector<16x32xf32>
    %76 = tpu.matmul %74, %75, %cst_68 {dimension_numbers = #tpu.dot_dimension_numbers<[1], [0], [0], [1], [0, 0, 1, 1], [], []>} : vector<16x16xf32>, vector<16x32xf32>, vector<16x32xf32> -> vector<16x32xf32>
    %77 = arith.subf %72, %73 : vector<16x32xf32>
    %78 = arith.subf %76, %72 : vector<16x32xf32>
    %79 = arith.subf %78, %73 : vector<16x32xf32>
    %c5 = arith.constant 5 : index
    %c0_69 = arith.constant 0 : index
    %c0_70 = arith.constant 0 : index
    %80 = vector.load %arg1[%c5, %c0_69, %c0_70] : memref<8x16x16xf32, #tpu.memory_space<vmem>>, vector<1x16x16xf32>
    %81 = vector.shape_cast %80 : vector<1x16x16xf32> to vector<16x16xf32>
    %c5_71 = arith.constant 5 : index
    %c0_72 = arith.constant 0 : index
    %c0_73 = arith.constant 0 : index
    %82 = vector.load %arg2[%c5_71, %c0_72, %c0_73] : memref<8x16x16xf32, #tpu.memory_space<vmem>>, vector<1x16x16xf32>
    %83 = vector.shape_cast %82 : vector<1x16x16xf32> to vector<16x16xf32>
    %c5_74 = arith.constant 5 : index
    %c0_75 = arith.constant 0 : index
    %c0_76 = arith.constant 0 : index
    %84 = vector.load %arg3[%c5_74, %c0_75, %c0_76] : memref<8x16x32xf32, #tpu.memory_space<vmem>>, vector<1x16x32xf32>
    %85 = vector.shape_cast %84 : vector<1x16x32xf32> to vector<16x32xf32>
    %c5_77 = arith.constant 5 : index
    %c0_78 = arith.constant 0 : index
    %c0_79 = arith.constant 0 : index
    %86 = vector.load %arg4[%c5_77, %c0_78, %c0_79] : memref<8x16x32xf32, #tpu.memory_space<vmem>>, vector<1x16x32xf32>
    %87 = vector.shape_cast %86 : vector<1x16x32xf32> to vector<16x32xf32>
    %cst_80 = arith.constant dense<0.000000e+00> : vector<16x32xf32>
    %88 = tpu.matmul %81, %85, %cst_80 {dimension_numbers = #tpu.dot_dimension_numbers<[1], [0], [0], [1], [0, 0, 1, 1], [], []>} : vector<16x16xf32>, vector<16x32xf32>, vector<16x32xf32> -> vector<16x32xf32>
    %cst_81 = arith.constant dense<0.000000e+00> : vector<16x32xf32>
    %89 = tpu.matmul %83, %87, %cst_81 {dimension_numbers = #tpu.dot_dimension_numbers<[1], [0], [0], [1], [0, 0, 1, 1], [], []>} : vector<16x16xf32>, vector<16x32xf32>, vector<16x32xf32> -> vector<16x32xf32>
    %90 = arith.addf %81, %83 : vector<16x16xf32>
    %91 = arith.addf %85, %87 : vector<16x32xf32>
    %cst_82 = arith.constant dense<0.000000e+00> : vector<16x32xf32>
    %92 = tpu.matmul %90, %91, %cst_82 {dimension_numbers = #tpu.dot_dimension_numbers<[1], [0], [0], [1], [0, 0, 1, 1], [], []>} : vector<16x16xf32>, vector<16x32xf32>, vector<16x32xf32> -> vector<16x32xf32>
    %93 = arith.subf %88, %89 : vector<16x32xf32>
    %94 = arith.subf %92, %88 : vector<16x32xf32>
    %95 = arith.subf %94, %89 : vector<16x32xf32>
    %c6 = arith.constant 6 : index
    %c0_83 = arith.constant 0 : index
    %c0_84 = arith.constant 0 : index
    %96 = vector.load %arg1[%c6, %c0_83, %c0_84] : memref<8x16x16xf32, #tpu.memory_space<vmem>>, vector<1x16x16xf32>
    %97 = vector.shape_cast %96 : vector<1x16x16xf32> to vector<16x16xf32>
    %c6_85 = arith.constant 6 : index
    %c0_86 = arith.constant 0 : index
    %c0_87 = arith.constant 0 : index
    %98 = vector.load %arg2[%c6_85, %c0_86, %c0_87] : memref<8x16x16xf32, #tpu.memory_space<vmem>>, vector<1x16x16xf32>
    %99 = vector.shape_cast %98 : vector<1x16x16xf32> to vector<16x16xf32>
    %c6_88 = arith.constant 6 : index
    %c0_89 = arith.constant 0 : index
    %c0_90 = arith.constant 0 : index
    %100 = vector.load %arg3[%c6_88, %c0_89, %c0_90] : memref<8x16x32xf32, #tpu.memory_space<vmem>>, vector<1x16x32xf32>
    %101 = vector.shape_cast %100 : vector<1x16x32xf32> to vector<16x32xf32>
    %c6_91 = arith.constant 6 : index
    %c0_92 = arith.constant 0 : index
    %c0_93 = arith.constant 0 : index
    %102 = vector.load %arg4[%c6_91, %c0_92, %c0_93] : memref<8x16x32xf32, #tpu.memory_space<vmem>>, vector<1x16x32xf32>
    %103 = vector.shape_cast %102 : vector<1x16x32xf32> to vector<16x32xf32>
    %cst_94 = arith.constant dense<0.000000e+00> : vector<16x32xf32>
    %104 = tpu.matmul %97, %101, %cst_94 {dimension_numbers = #tpu.dot_dimension_numbers<[1], [0], [0], [1], [0, 0, 1, 1], [], []>} : vector<16x16xf32>, vector<16x32xf32>, vector<16x32xf32> -> vector<16x32xf32>
    %cst_95 = arith.constant dense<0.000000e+00> : vector<16x32xf32>
    %105 = tpu.matmul %99, %103, %cst_95 {dimension_numbers = #tpu.dot_dimension_numbers<[1], [0], [0], [1], [0, 0, 1, 1], [], []>} : vector<16x16xf32>, vector<16x32xf32>, vector<16x32xf32> -> vector<16x32xf32>
    %106 = arith.addf %97, %99 : vector<16x16xf32>
    %107 = arith.addf %101, %103 : vector<16x32xf32>
    %cst_96 = arith.constant dense<0.000000e+00> : vector<16x32xf32>
    %108 = tpu.matmul %106, %107, %cst_96 {dimension_numbers = #tpu.dot_dimension_numbers<[1], [0], [0], [1], [0, 0, 1, 1], [], []>} : vector<16x16xf32>, vector<16x32xf32>, vector<16x32xf32> -> vector<16x32xf32>
    %109 = arith.subf %104, %105 : vector<16x32xf32>
    %110 = arith.subf %108, %104 : vector<16x32xf32>
    %111 = arith.subf %110, %105 : vector<16x32xf32>
    %c7 = arith.constant 7 : index
    %c0_97 = arith.constant 0 : index
    %c0_98 = arith.constant 0 : index
    %112 = vector.load %arg1[%c7, %c0_97, %c0_98] : memref<8x16x16xf32, #tpu.memory_space<vmem>>, vector<1x16x16xf32>
    %113 = vector.shape_cast %112 : vector<1x16x16xf32> to vector<16x16xf32>
    %c7_99 = arith.constant 7 : index
    %c0_100 = arith.constant 0 : index
    %c0_101 = arith.constant 0 : index
    %114 = vector.load %arg2[%c7_99, %c0_100, %c0_101] : memref<8x16x16xf32, #tpu.memory_space<vmem>>, vector<1x16x16xf32>
    %115 = vector.shape_cast %114 : vector<1x16x16xf32> to vector<16x16xf32>
    %c7_102 = arith.constant 7 : index
    %c0_103 = arith.constant 0 : index
    %c0_104 = arith.constant 0 : index
    %116 = vector.load %arg3[%c7_102, %c0_103, %c0_104] : memref<8x16x32xf32, #tpu.memory_space<vmem>>, vector<1x16x32xf32>
    %117 = vector.shape_cast %116 : vector<1x16x32xf32> to vector<16x32xf32>
    %c7_105 = arith.constant 7 : index
    %c0_106 = arith.constant 0 : index
    %c0_107 = arith.constant 0 : index
    %118 = vector.load %arg4[%c7_105, %c0_106, %c0_107] : memref<8x16x32xf32, #tpu.memory_space<vmem>>, vector<1x16x32xf32>
    %119 = vector.shape_cast %118 : vector<1x16x32xf32> to vector<16x32xf32>
    %cst_108 = arith.constant dense<0.000000e+00> : vector<16x32xf32>
    %120 = tpu.matmul %113, %117, %cst_108 {dimension_numbers = #tpu.dot_dimension_numbers<[1], [0], [0], [1], [0, 0, 1, 1], [], []>} : vector<16x16xf32>, vector<16x32xf32>, vector<16x32xf32> -> vector<16x32xf32>
    %cst_109 = arith.constant dense<0.000000e+00> : vector<16x32xf32>
    %121 = tpu.matmul %115, %119, %cst_109 {dimension_numbers = #tpu.dot_dimension_numbers<[1], [0], [0], [1], [0, 0, 1, 1], [], []>} : vector<16x16xf32>, vector<16x32xf32>, vector<16x32xf32> -> vector<16x32xf32>
    %122 = arith.addf %113, %115 : vector<16x16xf32>
    %123 = arith.addf %117, %119 : vector<16x32xf32>
    %cst_110 = arith.constant dense<0.000000e+00> : vector<16x32xf32>
    %124 = tpu.matmul %122, %123, %cst_110 {dimension_numbers = #tpu.dot_dimension_numbers<[1], [0], [0], [1], [0, 0, 1, 1], [], []>} : vector<16x16xf32>, vector<16x32xf32>, vector<16x32xf32> -> vector<16x32xf32>
    %125 = arith.subf %120, %121 : vector<16x32xf32>
    %126 = arith.subf %124, %120 : vector<16x32xf32>
    %127 = arith.subf %126, %121 : vector<16x32xf32>
    %128 = tpu.concatenate %13, %29, %45, %61, %77, %93, %109, %125 in 1 : vector<16x32xf32>, vector<16x32xf32>, vector<16x32xf32>, vector<16x32xf32>, vector<16x32xf32>, vector<16x32xf32>, vector<16x32xf32>, vector<16x32xf32> -> vector<16x256xf32>
    %c0_111 = arith.constant 0 : index
    %c0_112 = arith.constant 0 : index
    %129 = vector.load %arg5[%c0_111, %c0_112] : memref<16x256xf32, #tpu.memory_space<vmem>>, vector<16x256xf32>
    tpu.vector_store %arg5[%c0_111, %c0_112], %128 {strides = array<i32>} : memref<16x256xf32, #tpu.memory_space<vmem>>, vector<16x256xf32>,
    %130 = tpu.concatenate %15, %31, %47, %63, %79, %95, %111, %127 in 1 : vector<16x32xf32>, vector<16x32xf32>, vector<16x32xf32>, vector<16x32xf32>, vector<16x32xf32>, vector<16x32xf32>, vector<16x32xf32>, vector<16x32xf32> -> vector<16x256xf32>
    %c0_113 = arith.constant 0 : index
    %c0_114 = arith.constant 0 : index
    %131 = vector.load %arg6[%c0_113, %c0_114] : memref<16x256xf32, #tpu.memory_space<vmem>>, vector<16x256xf32>
    tpu.vector_store %arg6[%c0_113, %c0_114], %130 {strides = array<i32>} : memref<16x256xf32, #tpu.memory_space<vmem>>, vector<16x256xf32>,
    return
  }
  func.func @transform_0(%arg0: i32) -> (i32, i32, i32) {
    %c0_i32 = arith.constant 0 : i32
    %c0_i32_0 = arith.constant 0 : i32
    %c0_i32_1 = arith.constant 0 : i32
    return %arg0, %c0_i32, %c0_i32_0 : i32, i32, i32
  }
  func.func @transform_1(%arg0: i32) -> (i32, i32, i32) {
    %c0_i32 = arith.constant 0 : i32
    %c0_i32_0 = arith.constant 0 : i32
    %c0_i32_1 = arith.constant 0 : i32
    return %arg0, %c0_i32, %c0_i32_0 : i32, i32, i32
  }
  func.func @transform_2(%arg0: i32) -> (i32, i32, i32) {
    %c0_i32 = arith.constant 0 : i32
    %c0_i32_0 = arith.constant 0 : i32
    %c0_i32_1 = arith.constant 0 : i32
    return %arg0, %c0_i32, %c0_i32_0 : i32, i32, i32
  }
  func.func @transform_3(%arg0: i32) -> (i32, i32, i32) {
    %c0_i32 = arith.constant 0 : i32
    %c0_i32_0 = arith.constant 0 : i32
    %c0_i32_1 = arith.constant 0 : i32
    return %arg0, %c0_i32, %c0_i32_0 : i32, i32, i32
  }
  func.func @transform_4(%arg0: i32) -> (i32, i32) {
    %c0_i32 = arith.constant 0 : i32
    %c0_i32_0 = arith.constant 0 : i32
    return %c0_i32, %arg0 : i32, i32
  }
  func.func @transform_5(%arg0: i32) -> (i32, i32) {
    %c0_i32 = arith.constant 0 : i32
    %c0_i32_0 = arith.constant 0 : i32
    return %c0_i32, %arg0 : i32, i32
  }
}

</mosaic_0001>

<bundles_post_ra>
// kernel: custom-call.2
= control target key start
LH: loop header
LB: loop body
LE: loop exit
PB: predicated region body
PF: predicated region fallthrough
CT: control target
= control target key end

     0   :  { %2 = vsyncpa [#allocation0], 0  ;;  %s61_s0 = inlined_call_operand.hbm [shape: c64[8,16,32], index: 0, kind: input, shape index: {}]   ;;  %s62_s1 = inlined_call_operand.vmem [shape: f32[8,16,32], index: 1, kind: output, shape index: {}]  }
   0x1   :  { %s3_s8 = sshll.u32 %s62_s1, 4  ;;  %s9_s11 = scalar_lea.hbm %s61_s0, 2048  ;;  %s4_s8 = int_to_ptr.vmem [resolvable:$true] %s3_s8 }
   0x2   :  { %p10_p0 = scmp.ne.s32.totalorder %s61_s0, %s9_s11  ;;  %s11_s16 = scalar_lea.hbm %s61_s0, 4096 }
   0x3   :  { %p12_p1 = scmp.lt.u32.totalorder %s11_s16, %s9_s11  ;;  %p13_p2 = scmp.lt.u32.totalorder %s9_s11, %s61_s0 }
   0x5   :  { %p14_p3 = por %p13_p2, %p12_p1 }
   0x7   :  { %p15_p4 = pnand %p14_p3, %p10_p0 }
   0x9   :  { %18 = shalt.err (!%p15_p4)  }
   0xa   :  { %s19_s1 = scalar_lea.vmem %s4_s8, 2048  ;;  %p24_p6 = scmp.lt.s32.totalorder %s4_s8, %s4_s8 }
   0xb   :  { %p20_p5 = scmp.ne.s32.totalorder %s4_s8, %s19_s1  ;;  %p25_p7 = scmp.lt.s32.totalorder %s19_s1, %s19_s1 }
   0xd   :  { %p26_p8 = por %p25_p7, %p24_p6 }
   0xf   :  { %p27_p9 = pnand %p26_p8, %p20_p5 }
  0x11   :  { %30 = shalt.err (!%p27_p9)  }
  0x12   :  { %6 = dma.hbm_to_vmem [thread:$0]  %s61_s0, 2048, %s4_s8, [#allocation0] }
  0x13   :  { %31 = dma.done.wait [#allocation0], 2048  }
  0x14   :  { %32 = vsyncadd [#allocation0], 4294965248 }
  0x15   :  { %8 = vsyncpa [#allocation0], 1 }

// kernel: custom-call.1
= control target key start
LH: loop header
LB: loop body
LE: loop exit
PB: predicated region body
PF: predicated region fallthrough
CT: control target
= control target key end

     0   :  { %s59_s0 = inlined_call_operand.hbm [shape: c64[8,16,16], index: 0, kind: input, shape index: {}]   ;;  %s60_s1 = inlined_call_operand.vmem [shape: f32[8,16,16], index: 1, kind: output, shape index: {}]  }
   0x1   :  { %s2_s8 = scalar_lea.hbm %s59_s0, 2048 }
   0x2   :  { %3 = vsyncpa [#allocation0], 0  ;;  %s4_s11 = sshll.u32 %s60_s1, 4  ;;  %s34_s14 = scalar_lea.hbm %s59_s0, 4096  ;;  %s5_s11 = int_to_ptr.vmem [resolvable:$true] %s4_s11 }
   0x3   :  { %p11_p0 = scmp.ne.s32.totalorder %s2_s8, %s34_s14  ;;  %p13_p1 = scmp.lt.u32.totalorder %s2_s8, %s59_s0 }
   0x4   :  { %p14_p2 = scmp.lt.u32.totalorder %s34_s14, %s34_s14  ;;  %p16_p4 = scmp.lt.u32.totalorder %s34_s14, %s2_s8 }
   0x6   :  { %p15_p3 = por %p14_p2, %p13_p1 }
   0x8   :  { %p17_p5 = por %p16_p4, %p15_p3 }
   0xa   :  { %p18_p6 = pnand %p17_p5, %p11_p0 }
   0xc   :  { %21 = shalt.err (!%p18_p6)  }
   0xd   :  { %s22_s17 = scalar_lea.vmem %s5_s11, 2048  ;;  %p27_p8 = scmp.lt.s32.totalorder %s5_s11, %s5_s11 }
   0xe   :  { %p23_p7 = scmp.ne.s32.totalorder %s5_s11, %s22_s17  ;;  %p28_p9 = scmp.lt.s32.totalorder %s22_s17, %s22_s17 }
  0x10   :  { %p29_p10 = por %p28_p9, %p27_p8 }
  0x12   :  { %p30_p11 = pnand %p29_p10, %p23_p7 }
  0x14   :  { %33 = shalt.err (!%p30_p11)  }
  0x15   :  { %7 = dma.hbm_to_vmem [thread:$0]  %s2_s8, 2048, %s5_s11, [#allocation0] }
  0x16   :  { %35 = dma.done.wait [#allocation0], 2048  }
  0x17   :  { %36 = vsyncadd [#allocation0], 4294965248 }
  0x18   :  { %9 = vsyncpa [#allocation0], 1 }

// kernel: custom-call
= control target key start
LH: loop header
LB: loop body
LE: loop exit
PB: predicated region body
PF: predicated region fallthrough
CT: control target
= control target key end

     0   :  { %2 = vsyncpa [#allocation0], 0  ;;  %s61_s0 = inlined_call_operand.hbm [shape: c64[8,16,16], index: 0, kind: input, shape index: {}]   ;;  %s62_s1 = inlined_call_operand.vmem [shape: f32[8,16,16], index: 1, kind: output, shape index: {}]  }
   0x1   :  { %s3_s8 = sshll.u32 %s62_s1, 4  ;;  %s9_s11 = scalar_lea.hbm %s61_s0, 2048  ;;  %s4_s8 = int_to_ptr.vmem [resolvable:$true] %s3_s8 }
   0x2   :  { %p10_p0 = scmp.ne.s32.totalorder %s61_s0, %s9_s11  ;;  %s11_s16 = scalar_lea.hbm %s61_s0, 4096 }
   0x3   :  { %p12_p1 = scmp.lt.u32.totalorder %s11_s16, %s9_s11  ;;  %p13_p2 = scmp.lt.u32.totalorder %s9_s11, %s61_s0 }
   0x5   :  { %p14_p3 = por %p13_p2, %p12_p1 }
   0x7   :  { %p15_p4 = pnand %p14_p3, %p10_p0 }
   0x9   :  { %18 = shalt.err (!%p15_p4)  }
   0xa   :  { %s19_s1 = scalar_lea.vmem %s4_s8, 2048  ;;  %p24_p6 = scmp.lt.s32.totalorder %s4_s8, %s4_s8 }
   0xb   :  { %p20_p5 = scmp.ne.s32.totalorder %s4_s8, %s19_s1  ;;  %p25_p7 = scmp.lt.s32.totalorder %s19_s1, %s19_s1 }
   0xd   :  { %p26_p8 = por %p25_p7, %p24_p6 }
   0xf   :  { %p27_p9 = pnand %p26_p8, %p20_p5 }
  0x11   :  { %30 = shalt.err (!%p27_p9)  }
  0x12   :  { %6 = dma.hbm_to_vmem [thread:$0]  %s61_s0, 2048, %s4_s8, [#allocation0] }
  0x13   :  { %31 = dma.done.wait [#allocation0], 2048  }
  0x14   :  { %32 = vsyncadd [#allocation0], 4294965248 }
  0x15   :  { %8 = vsyncpa [#allocation0], 1 }

// kernel: custom-call.3
= control target key start
LH: loop header
LB: loop body
LE: loop exit
PB: predicated region body
PF: predicated region fallthrough
CT: control target
= control target key end

     0   :  { %s59_s0 = inlined_call_operand.hbm [shape: c64[8,16,32], index: 0, kind: input, shape index: {}]   ;;  %s60_s1 = inlined_call_operand.vmem [shape: f32[8,16,32], index: 1, kind: output, shape index: {}]  }
   0x1   :  { %s2_s8 = scalar_lea.hbm %s59_s0, 2048 }
   0x2   :  { %3 = vsyncpa [#allocation0], 0  ;;  %s4_s11 = sshll.u32 %s60_s1, 4  ;;  %s34_s14 = scalar_lea.hbm %s59_s0, 4096  ;;  %s5_s11 = int_to_ptr.vmem [resolvable:$true] %s4_s11 }
   0x3   :  { %p11_p0 = scmp.ne.s32.totalorder %s2_s8, %s34_s14  ;;  %p13_p1 = scmp.lt.u32.totalorder %s2_s8, %s59_s0 }
   0x4   :  { %p14_p2 = scmp.lt.u32.totalorder %s34_s14, %s34_s14  ;;  %p16_p4 = scmp.lt.u32.totalorder %s34_s14, %s2_s8 }
   0x6   :  { %p15_p3 = por %p14_p2, %p13_p1 }
   0x8   :  { %p17_p5 = por %p16_p4, %p15_p3 }
   0xa   :  { %p18_p6 = pnand %p17_p5, %p11_p0 }
   0xc   :  { %21 = shalt.err (!%p18_p6)  }
   0xd   :  { %s22_s17 = scalar_lea.vmem %s5_s11, 2048  ;;  %p27_p8 = scmp.lt.s32.totalorder %s5_s11, %s5_s11 }
   0xe   :  { %p23_p7 = scmp.ne.s32.totalorder %s5_s11, %s22_s17  ;;  %p28_p9 = scmp.lt.s32.totalorder %s22_s17, %s22_s17 }
  0x10   :  { %p29_p10 = por %p28_p9, %p27_p8 }
  0x12   :  { %p30_p11 = pnand %p29_p10, %p23_p7 }
  0x14   :  { %33 = shalt.err (!%p30_p11)  }
  0x15   :  { %7 = dma.hbm_to_vmem [thread:$0]  %s2_s8, 2048, %s5_s11, [#allocation0] }
  0x16   :  { %35 = dma.done.wait [#allocation0], 2048  }
  0x17   :  { %36 = vsyncadd [#allocation0], 4294965248 }
  0x18   :  { %9 = vsyncpa [#allocation0], 1 }

// kernel: custom-call.4
= control target key start
LH: loop header
LB: loop body
LE: loop exit
PB: predicated region body
PF: predicated region fallthrough
CT: control target
= control target key end

     0   :  { %s126_s0 = inlined_call_operand.vmem [shape: f32[8,16,32], index: 0, kind: input, shape index: {}]   ;;  %s127_s1 = inlined_call_operand.vmem [shape: f32[8,16,32], index: 1, kind: input, shape index: {}]   ;;  %s128_s2 = inlined_call_operand.hbm [shape: c64[8,16,32], index: 2, kind: output, shape index: {}]  }
   0x1   :  { %s87_s11 = scalar_lea.hbm %s128_s2, 2048 }
   0x2   :  { %4 = vsyncpa [#allocation0], 0  ;;  %s5_s14 = sshll.u32 %s126_s0, 4  ;;  %s6_s14 = int_to_ptr.vmem [resolvable:$true] %s5_s14 }
   0x3   :  { %s18_s15 = scalar_lea.vmem %s6_s14, 2048  ;;  %p23_p1 = scmp.lt.s32.totalorder %s6_s14, %s6_s14 }
   0x4   :  { %p19_p0 = scmp.ne.s32.totalorder %s6_s14, %s18_s15  ;;  %p24_p2 = scmp.lt.s32.totalorder %s18_s15, %s18_s15 }
   0x6   :  { %p25_p3 = por %p24_p2, %p23_p1 }
   0x8   :  { %p26_p4 = pnand %p25_p3, %p19_p0 }
   0xa   :  { %29 = shalt.err (!%p26_p4)  }
   0xb   :  { %p31_p5 = scmp.ne.s32.totalorder %s128_s2, %s87_s11  ;;  %s32_s0 = scalar_lea.hbm %s128_s2, 4096 }
   0xc   :  { %p33_p6 = scmp.lt.u32.totalorder %s32_s0, %s87_s11  ;;  %p34_p7 = scmp.lt.u32.totalorder %s87_s11, %s128_s2 }
   0xe   :  { %p35_p8 = por %p34_p7, %p33_p6 }
  0x10   :  { %p36_p9 = pnand %p35_p8, %p31_p5 }
  0x12   :  { %39 = shalt.err (!%p36_p9)  }
  0x13   :  { %8 = dma.vmem_to_hbm [thread:$0]  %s6_s14, 2048, %s128_s2, [#allocation0] }
  0x14   :  { %65 = dma.done.wait [#allocation0], 2048  }
  0x15   :  { %66 = vsyncadd [#allocation0], 4294965248 }
  0x16   :  { %10 = vsyncpa [#allocation0], 1 }
  0x17   :  { %11 = vsyncpa [#allocation1], 0  ;;  %s12_s28 = sshll.u32 %s127_s1, 4  ;;  %s13_s28 = int_to_ptr.vmem [resolvable:$true] %s12_s28 }
  0x18   :  { %s40_s29 = scalar_lea.vmem %s13_s28, 2048  ;;  %p45_p11 = scmp.lt.s32.totalorder %s13_s28, %s13_s28 }
  0x19   :  { %p41_p10 = scmp.ne.s32.totalorder %s13_s28, %s40_s29  ;;  %p46_p12 = scmp.lt.s32.totalorder %s40_s29, %s40_s29 }
  0x1b   :  { %p47_p13 = por %p46_p12, %p45_p11 }
  0x1d   :  { %p48_p0 = pnand %p47_p13, %p41_p10 }
  0x1f   :  { %51 = shalt.err (!%p48_p0)  }
  0x20   :  { %p53_p1 = scmp.ne.s32.totalorder %s87_s11, %s32_s0  ;;  %p56_p2 = scmp.lt.u32.totalorder %s32_s0, %s32_s0 }
  0x22   :  { %p57_p3 = por %p56_p2, %p34_p7 }
  0x24   :  { %p59_p4 = por %p57_p3, %p33_p6 }
  0x26   :  { %p60_p5 = pnand %p59_p4, %p53_p1 }
  0x28   :  { %63 = shalt.err (!%p60_p5)  }
  0x29   :  { %15 = dma.vmem_to_hbm [thread:$0]  %s13_s28, 2048, %s87_s11, [#allocation1] }
  0x2a   :  { %67 = dma.done.wait [#allocation1], 2048  }
  0x2b   :  { %68 = vsyncadd [#allocation1], 4294965248 }
  0x2c   :  { %17 = vsyncpa [#allocation1], 1 }

// kernel: focusing_forward_pallas.1
= control target key start
LH: loop header
LB: loop body
LE: loop exit
PB: predicated region body
PF: predicated region fallthrough
CT: control target
= control target key end

     0   :  { %vm27_vm0 = vcmask 130048   ;;  %s2744_s19 = smov 96   ;;  %vm2184_vm1 = vcmask 261120   ;;  %vm2187_vm2 = vcmask 523264   ;;  %vm2190_vm3 = vcmask 785408   ;;  %s3143_s2 = inlined_call_operand.vmem [shape: f32[8,16,32], index: 2, kind: input, shape index: {}]   ;;  %s3144_s3 = inlined_call_operand.vmem [shape: f32[8,16,32], index: 3, kind: input, shape index: {}]   ;;  %s3145_s0 = inlined_call_operand.vmem [shape: f32[8,16,16], index: 0, kind: input, shape index: {}]   ;;  %s3146_s1 = inlined_call_operand.vmem [shape: f32[8,16,16], index: 1, kind: input, shape index: {}]   ;;  %s3147_s4 = inlined_call_operand.vmem [shape: f32[16,256], index: 4, kind: output, shape index: {0}]   ;;  %s3148_s5 = inlined_call_operand.vmem [shape: f32[16,256], index: 5, kind: output, shape index: {1}]  }
   0x1   :  { %v23_v0 = vld [vmem:[%s3143_s2] sm:$0xff]  ;;  %v24_v1 = vld [vmem:[%s3143_s2 + $0x8] sm:$0xff]  ;;  %v2285_v10 = vld [vmem:[%s3143_s2 + $0x10] sm:$0xff] }
   0x2   :  { %v25_v2 = vld [vmem:[%s3144_s3] sm:$0xff]  ;;  %v2643_v3 = vpack.c.bf16 %v24_v1, %v23_v0  ;;  %v26_v4 = vld [vmem:[%s3144_s3 + $0x8] sm:$0xff]  ;;  %v2286_v11 = vld [vmem:[%s3143_s2 + $0x18] sm:$0xff] }
   0x3   :  { %v192_v5 = vadd.f32 %v25_v2, %v23_v0  ;;  %v19_v6 = vld [vmem:[%s3145_s0] sm:$0xff]  ;;  %v2647_v8 = vpack.c.bf16 %v26_v4, %v25_v2  ;;  %v193_v9 = vadd.f32 %v26_v4, %v24_v1  ;;  %v20_v12 = vld [vmem:[%s3145_s0 + $0x8] sm:$0xff]  ;;  %v2655_v14 = vpack.c.bf16 %v2286_v11, %v2285_v10  ;;  %v2287_v15 = vld [vmem:[%s3144_s3 + $0x10] sm:$0xff] }
   0x4   :  { %v21_v7 = vld [vmem:[%s3146_s1] sm:$0xff]  ;;  %2479 = vmatprep.mubr.msk.f32.mxu0 %vm27_vm0, %v19_v6  ;;  %2644 = vmatprep.subr.bf16.mxu0 %v2643_v3  ;;  %v2288_v16 = vld [vmem:[%s3144_s3 + $0x18] sm:$0xff]  ;;  %v22_v18 = vld [vmem:[%s3146_s1 + $0x8] sm:$0xff]  ;;  %v457_v19 = vadd.f32 %v2287_v15, %v2285_v10 }
   0x5   :  { %2486 = vmatprep.mubr.msk.f32.mxu1 %vm27_vm0, %v21_v7  ;;  %2648 = vmatprep.subr.bf16.mxu1 %v2647_v8  ;;  %v2651_v13 = vpack.c.bf16 %v193_v9, %v192_v5  ;;  %v190_v17 = vadd.f32 %v21_v7, %v19_v6  ;;  %v458_v20 = vadd.f32 %v2288_v16, %v2286_v11  ;;  %v2283_v22 = vld [vmem:[%s3146_s1 + $0x10] sm:$0xff]  ;;  %v2299_v26 = vld [vmem:[%s3143_s2 + $0x20] sm:$0xff]  ;;  %v2300_v27 = vld [vmem:[%s3143_s2 + $0x28] sm:$0xff] }
   0x6   :  { %2646 = vmatpush3.bf16.msra.mxu0 %v2643_v3  ;;  %2650 = vmatpush3.bf16.msra.mxu1 %v2647_v8  ;;  %v2659_v21 = vpack.c.bf16 %v2288_v16, %v2287_v15  ;;  %v191_v23 = vadd.f32 %v22_v18, %v20_v12  ;;  %v2281_v24 = vld [vmem:[%s3145_s0 + $0x10] sm:$0xff]  ;;  %v2301_v28 = vld [vmem:[%s3144_s3 + $0x20] sm:$0xff]  ;;  %v2302_v29 = vld [vmem:[%s3144_s3 + $0x28] sm:$0xff]  ;;  %v2667_v33 = vpack.c.bf16 %v2300_v27, %v2299_v26 }
   0x7   :  { %2652 = vmatprep.subr.bf16.mxu0 %v2651_v13  ;;  %2656 = vmatprep.subr.bf16.mxu1 %v2655_v14  ;;  %v2663_v25 = vpack.c.bf16 %v458_v20, %v457_v19  ;;  %v2282_v30 = vld [vmem:[%s3145_s0 + $0x18] sm:$0xff]  ;;  %v455_v31 = vadd.f32 %v2283_v22, %v2281_v24  ;;  %v722_v34 = vadd.f32 %v2301_v28, %v2299_v26  ;;  %v2313_v37 = vld [vmem:[%s3143_s2 + $0x30] sm:$0xff]  ;;  %v2295_v42 = vld [vmem:[%s3145_s0 + $0x20] sm:$0xff] }
   0x8   :  { %v2284_v32 = vld [vmem:[%s3146_s1 + $0x18] sm:$0xff]  ;;  %v723_v35 = vadd.f32 %v2302_v29, %v2300_v27  ;;  %v2671_v36 = vpack.c.bf16 %v2302_v29, %v2301_v28  ;;  %v2315_v40 = vld [vmem:[%s3144_s3 + $0x30] sm:$0xff]  ;;  %v2297_v44 = vld [vmem:[%s3146_s1 + $0x20] sm:$0xff] }
   0x9   :  { %2480 = vmatmul.mubr.msk.f32.vlgmr.msra.gmra.mrb[0].mxu0 %vm27_vm0, %v20_v12  ;;  %2487 = vmatmul.mubr.msk.f32.vlgmr.msra.gmra.mrb[0].mxu1 %vm27_vm0, %v22_v18  ;;  %v456_v38 = vadd.f32 %v2284_v32, %v2282_v30  ;;  %v2314_v39 = vld [vmem:[%s3143_s2 + $0x38] sm:$0xff]  ;;  %v987_v46 = vadd.f32 %v2315_v40, %v2313_v37  ;;  %v2296_v48 = vld [vmem:[%s3145_s0 + $0x28] sm:$0xff]  ;;  %v720_v49 = vadd.f32 %v2297_v44, %v2295_v42  ;;  %v2311_v52 = vld [vmem:[%s3146_s1 + $0x30] sm:$0xff] }
   0xa   :  { %2654 = vmatpush3.bf16.msra.mxu0 %v2651_v13  ;;  %2658 = vmatpush3.bf16.msra.mxu1 %v2655_v14  ;;  %v2316_v41 = vld [vmem:[%s3144_s3 + $0x38] sm:$0xff]  ;;  %v2675_v43 = vpack.c.bf16 %v723_v35, %v722_v34  ;;  %v2679_v45 = vpack.c.bf16 %v2314_v39, %v2313_v37  ;;  %v2298_v50 = vld [vmem:[%s3146_s1 + $0x28] sm:$0xff]  ;;  %v2309_v54 = vld [vmem:[%s3145_s0 + $0x30] sm:$0xff] }
   0xb   :  { %2493 = vmatprep.mubr.msk.f32.mxu0 %vm27_vm0, %v190_v17  ;;  %2500 = vmatprep.mubr.msk.f32.mxu1 %vm27_vm0, %v2281_v24  ;;  %v988_v47 = vadd.f32 %v2316_v41, %v2314_v39  ;;  %v2683_v51 = vpack.c.bf16 %v2316_v41, %v2315_v40  ;;  %v721_v53 = vadd.f32 %v2298_v50, %v2296_v48  ;;  %v2327_v56 = vld [vmem:[%s3143_s2 + $0x40] sm:$0xff]  ;;  %v2328_v57 = vld [vmem:[%s3143_s2 + $0x48] sm:$0xff]  ;;  %v2310_v60 = vld [vmem:[%s3145_s0 + $0x38] sm:$0xff] }
   0xc   :  { %2660 = vmatprep.subr.bf16.mxu0 %v2659_v21  ;;  %2664 = vmatprep.subr.bf16.mxu1 %v2663_v25  ;;  %v2329_v58 = vld [vmem:[%s3144_s3 + $0x40] sm:$0xff]  ;;  %v2330_v59 = vld [vmem:[%s3144_s3 + $0x48] sm:$0xff]  ;;  %v985_v61 = vadd.f32 %v2311_v52, %v2309_v54  ;;  %v2312_v62 = vld [vmem:[%s3146_s1 + $0x38] sm:$0xff]  ;;  %v2691_v63 = vpack.c.bf16 %v2328_v57, %v2327_v56 }
   0xd   :  { %2494 = vmatmul.mubr.msk.f32.vlgmr.msra.gmra.mrb[2].mxu0 %vm27_vm0, %v191_v23  ;;  %2501 = vmatmul.mubr.msk.f32.vlgmr.msra.gmra.mrb[2].mxu1 %vm27_vm0, %v2282_v30  ;;  %v2687_v55 = vpack.c.bf16 %v988_v47, %v987_v46  ;;  %v1252_v0 = vadd.f32 %v2329_v58, %v2327_v56  ;;  %v1253_v1 = vadd.f32 %v2330_v59, %v2328_v57  ;;  %v2341_v3 = vld [vmem:[%s3143_s2 + $0x50] sm:$0xff]  ;;  %v2342_v5 = vld [vmem:[%s3143_s2 + $0x58] sm:$0xff]  ;;  %v2323_v8 = vld [vmem:[%s3145_s0 + $0x40] sm:$0xff] }
   0xe   :  { %2662 = vmatpush3.bf16.msra.mxu0 %v2659_v21  ;;  %2666 = vmatpush3.bf16.msra.mxu1 %v2663_v25  ;;  %v2695_v2 = vpack.c.bf16 %v2330_v59, %v2329_v58  ;;  %v986_v4 = vadd.f32 %v2312_v62, %v2310_v60  ;;  %v2343_v6 = vld [vmem:[%s3144_s3 + $0x50] sm:$0xff]  ;;  %v2344_v7 = vld [vmem:[%s3144_s3 + $0x58] sm:$0xff]  ;;  %v2325_v10 = vld [vmem:[%s3146_s1 + $0x40] sm:$0xff]  ;;  %v2703_v11 = vpack.c.bf16 %v2342_v5, %v2341_v3 }
   0xf   :  { %2507 = vmatprep.mubr.msk.f32.mxu0 %vm27_vm0, %v2283_v22  ;;  %2514 = vmatprep.mubr.msk.f32.mxu1 %vm27_vm0, %v455_v31  ;;  %v2699_v9 = vpack.c.bf16 %v1253_v1, %v1252_v0  ;;  %v1517_v12 = vadd.f32 %v2343_v6, %v2341_v3  ;;  %v1518_v13 = vadd.f32 %v2344_v7, %v2342_v5  ;;  %v2324_v14 = vld [vmem:[%s3145_s0 + $0x48] sm:$0xff]  ;;  %v2337_v17 = vld [vmem:[%s3145_s0 + $0x50] sm:$0xff]  ;;  %v2355_v20 = vld [vmem:[%s3143_s2 + $0x60] sm:$0xff] }
  0x10   :  { %2668 = vmatprep.subr.bf16.mxu0 %v2667_v33  ;;  %2672 = vmatprep.subr.bf16.mxu1 %v2671_v36  ;;  %v1250_v15 = vadd.f32 %v2325_v10, %v2323_v8  ;;  %v2326_v16 = vld [vmem:[%s3146_s1 + $0x48] sm:$0xff]  ;;  %v2707_v18 = vpack.c.bf16 %v2344_v7, %v2343_v6  ;;  %v2339_v19 = vld [vmem:[%s3146_s1 + $0x50] sm:$0xff]  ;;  %v2357_v24 = vld [vmem:[%s3144_s3 + $0x60] sm:$0xff] }
  0x11   :  { %2508 = vmatmul.mubr.msk.f32.vlgmr.msra.gmra.mrb[4].mxu0 %vm27_vm0, %v2284_v32  ;;  %2515 = vmatmul.mubr.msk.f32.vlgmr.msra.gmra.mrb[4].mxu1 %vm27_vm0, %v456_v38  ;;  %v1251_v21 = vadd.f32 %v2326_v16, %v2324_v14  ;;  %v2711_v22 = vpack.c.bf16 %v1518_v13, %v1517_v12  ;;  %v2356_v23 = vld [vmem:[%s3143_s2 + $0x68] sm:$0xff]  ;;  %v2338_v26 = vld [vmem:[%s3145_s0 + $0x58] sm:$0xff]  ;;  %v1515_v27 = vadd.f32 %v2339_v19, %v2337_v17  ;;  %v2351_v38 = vld [vmem:[%s3145_s0 + $0x60] sm:$0xff] }
  0x12   :  { %2670 = vmatpush3.bf16.msra.mxu0 %v2667_v33  ;;  %2674 = vmatpush3.bf16.msra.mxu1 %v2671_v36  ;;  %v2358_v25 = vld [vmem:[%s3144_s3 + $0x68] sm:$0xff]  ;;  %v2340_v28 = vld [vmem:[%s3146_s1 + $0x58] sm:$0xff]  ;;  %v2715_v29 = vpack.c.bf16 %v2356_v23, %v2355_v20  ;;  %v1782_v30 = vadd.f32 %v2357_v24, %v2355_v20  ;;  %v2369_v33 = vld [vmem:[%s3143_s2 + $0x70] sm:$0xff] }
  0x13   :  { %2521 = vmatprep.mubr.msk.f32.mxu0 %vm27_vm0, %v2295_v42  ;;  %2528 = vmatprep.mubr.msk.f32.mxu1 %vm27_vm0, %v2297_v44  ;;  %v1783_v31 = vadd.f32 %v2358_v25, %v2356_v23  ;;  %v2719_v32 = vpack.c.bf16 %v2358_v25, %v2357_v24  ;;  %v1516_v34 = vadd.f32 %v2340_v28, %v2338_v26  ;;  %v2370_v35 = vld [vmem:[%s3143_s2 + $0x78] sm:$0xff]  ;;  %v2371_v36 = vld [vmem:[%s3144_s3 + $0x70] sm:$0xff]  ;;  %v2353_v40 = vld [vmem:[%s3146_s1 + $0x60] sm:$0xff] }
  0x14   :  { %2676 = vmatprep.subr.bf16.mxu0 %v2675_v43  ;;  %2680 = vmatprep.subr.bf16.mxu1 %v2679_v45  ;;  %v2372_v37 = vld [vmem:[%s3144_s3 + $0x78] sm:$0xff]  ;;  %v2727_v41 = vpack.c.bf16 %v2370_v35, %v2369_v33  ;;  %v2047_v42 = vadd.f32 %v2371_v36, %v2369_v33  ;;  %v2352_v44 = vld [vmem:[%s3145_s0 + $0x68] sm:$0xff]  ;;  %v1780_v46 = vadd.f32 %v2353_v40, %v2351_v38 }
  0x15   :  { %2522 = vmatmul.mubr.msk.f32.vlgmr.msra.gmra.mrb[6].mxu0 %vm27_vm0, %v2296_v48  ;;  %2529 = vmatmul.mubr.msk.f32.vlgmr.msra.gmra.mrb[6].mxu1 %vm27_vm0, %v2298_v50  ;;  %v2723_v39 = vpack.c.bf16 %v1783_v31, %v1782_v30  ;;  %v2731_v47 = vpack.c.bf16 %v2372_v37, %v2371_v36 }
  0x16   :  { %2678 = vmatpush3.bf16.msra.mxu0 %v2675_v43  ;;  %2682 = vmatpush3.bf16.msra.mxu1 %v2679_v45  ;;  %v2048_v43 = vadd.f32 %v2372_v37, %v2370_v35  ;;  %v2354_v45 = vld [vmem:[%s3146_s1 + $0x68] sm:$0xff] }
  0x17   :  { %2535 = vmatprep.mubr.msk.f32.mxu0 %vm27_vm0, %v720_v49  ;;  %2542 = vmatprep.mubr.msk.f32.mxu1 %vm27_vm0, %v2309_v54  ;;  %v1781_v48 = vadd.f32 %v2354_v45, %v2352_v44  ;;  %v2365_v49 = vld [vmem:[%s3145_s0 + $0x70] sm:$0xff] }
  0x18   :  { %2684 = vmatprep.subr.bf16.mxu0 %v2683_v51  ;;  %2688 = vmatprep.subr.bf16.mxu1 %v2687_v55  ;;  %v2735_v50 = vpack.c.bf16 %v2048_v43, %v2047_v42 }
  0x19   :  { %2536 = vmatmul.mubr.msk.f32.vlgmr.msra.gmra.mrb[8].mxu0 %vm27_vm0, %v721_v53  ;;  %2543 = vmatmul.mubr.msk.f32.vlgmr.msra.gmra.mrb[8].mxu1 %vm27_vm0, %v2310_v60  ;;  %v2368_v53 = vld [vmem:[%s3146_s1 + $0x78] sm:$0xff] }
  0x1a   :  { %2686 = vmatpush3.bf16.msra.mxu0 %v2683_v51  ;;  %2690 = vmatpush3.bf16.msra.mxu1 %v2687_v55  ;;  %v2367_v51 = vld [vmem:[%s3146_s1 + $0x70] sm:$0xff]  ;;  %s2743_s1 = smov 64  }
  0x1b   :  { %2549 = vmatprep.mubr.msk.f32.mxu0 %vm27_vm0, %v2311_v52  ;;  %2556 = vmatprep.mubr.msk.f32.mxu1 %vm27_vm0, %v985_v61  ;;  %v2366_v52 = vld [vmem:[%s3145_s0 + $0x78] sm:$0xff]  ;;  %v2045_v54 = vadd.f32 %v2367_v51, %v2365_v49  ;;  %s2742_s0 = smov 32  }
  0x1c   :  { %2692 = vmatprep.subr.bf16.mxu0 %v2691_v63  ;;  %2696 = vmatprep.subr.bf16.mxu1 %v2695_v2  ;;  %v2046_v55 = vadd.f32 %v2368_v53, %v2366_v52 }
  0x1d   :  { %2550 = vmatmul.mubr.msk.f32.vlgmr.msra.gmra.mrb[10].mxu0 %vm27_vm0, %v2312_v62  ;;  %2557 = vmatmul.mubr.msk.f32.vlgmr.msra.gmra.mrb[10].mxu1 %vm27_vm0, %v986_v4 }
  0x1e   :  { %2694 = vmatpush3.bf16.msra.mxu0 %v2691_v63  ;;  %2698 = vmatpush3.bf16.msra.mxu1 %v2695_v2 }
  0x1f   :  { %2563 = vmatprep.mubr.msk.f32.mxu0 %vm27_vm0, %v2323_v8  ;;  %2570 = vmatprep.mubr.msk.f32.mxu1 %vm27_vm0, %v2325_v10 }
  0x20   :  { %2700 = vmatprep.subr.bf16.mxu0 %v2699_v9  ;;  %2704 = vmatprep.subr.bf16.mxu1 %v2703_v11 }
  0x21   :  { %2564 = vmatmul.mubr.msk.f32.vlgmr.msra.gmra.mrb[12].mxu0 %vm27_vm0, %v2324_v14  ;;  %2571 = vmatmul.mubr.msk.f32.vlgmr.msra.gmra.mrb[12].mxu1 %vm27_vm0, %v2326_v16 }
  0x22   :  { %2702 = vmatpush3.bf16.msra.mxu0 %v2699_v9  ;;  %2706 = vmatpush3.bf16.msra.mxu1 %v2703_v11 }
  0x23   :  { %2577 = vmatprep.mubr.msk.f32.mxu0 %vm27_vm0, %v1250_v15  ;;  %2584 = vmatprep.mubr.msk.f32.mxu1 %vm27_vm0, %v2337_v17 }
  0x24   :  { %2708 = vmatprep.subr.bf16.mxu0 %v2707_v18  ;;  %2712 = vmatprep.subr.bf16.mxu1 %v2711_v22 }
  0x25   :  { %2578 = vmatmul.mubr.msk.f32.vlgmr.msra.gmra.mrb[14].mxu0 %vm27_vm0, %v1251_v21  ;;  %2585 = vmatmul.mubr.msk.f32.vlgmr.msra.gmra.mrb[14].mxu1 %vm27_vm0, %v2338_v26 }
  0x26   :  { %2710 = vmatpush3.bf16.msra.mxu0 %v2707_v18  ;;  %2714 = vmatpush3.bf16.msra.mxu1 %v2711_v22 }
  0x27   :  { %2591 = vmatprep.mubr.msk.f32.mxu0 %vm27_vm0, %v2339_v19  ;;  %2598 = vmatprep.mubr.msk.f32.mxu1 %vm27_vm0, %v1515_v27 }
  0x28   :  { %2716 = vmatprep.subr.bf16.mxu0 %v2715_v29  ;;  %2720 = vmatprep.subr.bf16.mxu1 %v2719_v32 }
  0x29   :  { %2592 = vmatmul.mubr.msk.f32.vlgmr.msra.gmra.mrb[16].mxu0 %vm27_vm0, %v2340_v28  ;;  %2599 = vmatmul.mubr.msk.f32.vlgmr.msra.gmra.mrb[16].mxu1 %vm27_vm0, %v1516_v34 }
  0x2a   :  { %2718 = vmatpush3.bf16.msra.mxu0 %v2715_v29  ;;  %2605 = vmatprep.mubr.msk.f32.mxu0 %vm27_vm0, %v2351_v38 }
  0x2b   :  { %2722 = vmatpush3.bf16.msra.mxu1 %v2719_v32  ;;  %2724 = vmatprep.subr.bf16.mxu0 %v2723_v39 }
  0x2c   :  { %2612 = vmatprep.mubr.msk.f32.mxu1 %vm27_vm0, %v2353_v40  ;;  %2728 = vmatprep.subr.bf16.mxu1 %v2727_v41 }
  0x2d   :  { %2606 = vmatmul.mubr.msk.f32.vlgmr.msra.gmra.mrb[18].mxu0 %vm27_vm0, %v2352_v44 }
  0x2e   :  { %2726 = vmatpush3.bf16.msra.mxu0 %v2723_v39  ;;  %2613 = vmatmul.mubr.msk.f32.vlgmr.msra.gmra.mrb[18].mxu1 %vm27_vm0, %v2354_v45 }
  0x2f   :  { %2619 = vmatprep.mubr.msk.f32.mxu0 %vm27_vm0, %v1780_v46  ;;  %2730 = vmatpush3.bf16.msra.mxu1 %v2727_v41 }
  0x30   :  { %2732 = vmatprep.subr.bf16.mxu0 %v2731_v47  ;;  %2626 = vmatprep.mubr.msk.f32.mxu1 %vm27_vm0, %v2365_v49 }
  0x31   :  { %2620 = vmatmul.mubr.msk.f32.vlgmr.msra.gmra.mrb[20].mxu0 %vm27_vm0, %v1781_v48  ;;  %2736 = vmatprep.subr.bf16.mxu1 %v2735_v50 }
  0x32   :  { %2734 = vmatpush3.bf16.msra.mxu0 %v2731_v47  ;;  %2627 = vmatmul.mubr.msk.f32.vlgmr.msra.gmra.mrb[20].mxu1 %vm27_vm0, %v2366_v52 }
  0x33   :  { %2633 = vmatprep.mubr.msk.f32.mxu0 %vm27_vm0, %v2367_v51  ;;  %2738 = vmatpush3.bf16.msra.mxu1 %v2735_v50 }
  0x34   :  { %2640 = vmatprep.mubr.msk.f32.mxu1 %vm27_vm0, %v2045_v54 }
  0x35   :  { %2634 = vmatmul.mubr.msk.f32.vlgmr.msra.gmra.mrb[22].mxu0 %vm27_vm0, %v2368_v53 }
  0x36   :  { %2641 = vmatmul.mubr.msk.f32.vlgmr.msra.gmra.mrb[22].mxu1 %vm27_vm0, %v2046_v55 }
  0xdc   :  { %v3015_v56 = vpop.f32.mrb[0].mxu0  ;;  %v3017_v57 = vpop.f32.mrb[0].mxu1 }
  0xdd   :  { %v3019_v58 = vpop.f32.mrb[1].mxu0  ;;  %v276_v59 = vsub.f32 %v3015_v56, %v3017_v57  ;;  %v3023_v60 = vpop.f32.mrb[1].mxu1 }
  0xde   :  { %v275_v61 = vsub.f32 %v3019_v58, %v3023_v60 }
  0xe0   :  { %v2495_v62 = vpop.f32.mrb[2].mxu0  ;;  %v2502_v1 = vpop.f32.mrb[2].mxu1 }
  0xe1   :  { %v278_v63 = vsub.f32 %v2495_v62, %v3015_v56  ;;  %v266_v0 = vpop.f32.mrb[3].mxu0  ;;  %v365_v3 = vpop.f32.mrb[3].mxu1 }
  0xe2   :  { %v277_v2 = vsub.f32 %v266_v0, %v3019_v58 }
  0xe3   :  { %v3030_v4 = vsub.f32 %v278_v63, %v3017_v57 }
  0xe4   :  { %v3033_v5 = vsub.f32 %v277_v2, %v3023_v60  ;;  %v2509_v6 = vpop.f32.mrb[4].mxu0  ;;  %v2516_v7 = vpop.f32.mrb[4].mxu1 }
  0xe5   :  { %v446_v8 = vpop.f32.mrb[5].mxu0  ;;  %v541_v9 = vsub.f32 %v2502_v1, %v2509_v6  ;;  %v543_v10 = vsub.f32 %v2516_v7, %v2502_v1  ;;  %v531_v12 = vpop.f32.mrb[5].mxu1 }
  0xe6   :  { %v540_v11 = vsub.f32 %v365_v3, %v446_v8  ;;  %v542_v13 = vsub.f32 %v531_v12, %v365_v3 }
  0xe7   :  { %2140 = vrot.lane.b32.xlu0 %v541_v9, %s2742_s0  ;;  %v545_v15 = vsub.f32 %v543_v10, %v2509_v6 }
  0xe8   :  { %v2523_v14 = vpop.f32.mrb[6].mxu0  ;;  %v544_v16 = vsub.f32 %v542_v13, %v446_v8  ;;  %v2530_v17 = vpop.f32.mrb[6].mxu1 }
  0xe9   :  { %v630_v18 = vpop.f32.mrb[7].mxu0  ;;  %v806_v19 = vsub.f32 %v2523_v14, %v2530_v17  ;;  %v711_v20 = vpop.f32.mrb[7].mxu1  ;;  %2207 = vrot.lane.b32.xlu1 %v545_v15, %s2742_s0 }
  0xea   :  { %v805_v21 = vsub.f32 %v630_v18, %v711_v20 }
  0xeb   :  { %2138 = vrot.lane.b32.xlu0 %v540_v11, %s2742_s0 }
  0xec   :  { %v2537_v22 = vpop.f32.mrb[8].mxu0  ;;  %v2544_v25 = vpop.f32.mrb[8].mxu1 }
  0xed   :  { %v808_v23 = vsub.f32 %v2537_v22, %v2523_v14  ;;  %v796_v24 = vpop.f32.mrb[9].mxu0  ;;  %2148 = vrot.lane.b32.xlu1 %v806_v19, %s2743_s1  ;;  %v895_v27 = vpop.f32.mrb[9].mxu1 }
  0xee   :  { %v807_v26 = vsub.f32 %v796_v24, %v630_v18 }
  0xef   :  { %v810_v28 = vsub.f32 %v808_v23, %v2530_v17  ;;  %2205 = vrot.lane.b32.xlu0 %v544_v16, %s2742_s0 }
  0xf0   :  { %v809_v29 = vsub.f32 %v807_v26, %v711_v20  ;;  %v2551_v30 = vpop.f32.mrb[10].mxu0  ;;  %v2558_v32 = vpop.f32.mrb[10].mxu1 }
  0xf1   :  { %v1071_v31 = vsub.f32 %v2544_v25, %v2551_v30  ;;  %v976_v33 = vpop.f32.mrb[11].mxu0  ;;  %v1073_v34 = vsub.f32 %v2558_v32, %v2544_v25  ;;  %v1061_v35 = vpop.f32.mrb[11].mxu1  ;;  %2215 = vrot.lane.b32.xlu1 %v810_v28, %s2743_s1 }
  0xf2   :  { %v1070_v36 = vsub.f32 %v895_v27, %v976_v33  ;;  %v1072_v37 = vsub.f32 %v1061_v35, %v895_v27 }
  0xf3   :  { %2146 = vrot.lane.b32.xlu0 %v805_v21, %s2743_s1  ;;  %v1075_v38 = vsub.f32 %v1073_v34, %v2551_v30 }
  0xf4   :  { %v3042_v39 = vpop.f32.mrb[12].mxu0  ;;  %v1074_v40 = vsub.f32 %v1072_v37, %v976_v33  ;;  %v3044_v41 = vpop.f32.mrb[12].mxu1 }
  0xf5   :  { %v3046_v42 = vpop.f32.mrb[13].mxu0  ;;  %v1336_v43 = vsub.f32 %v3042_v39, %v3044_v41  ;;  %v3050_v44 = vpop.f32.mrb[13].mxu1  ;;  %2156 = vrot.lane.b32.xlu1 %v1071_v31, %s2744_s19 }
  0xf6   :  { %v1335_v45 = vsub.f32 %v3046_v42, %v3050_v44 }
  0xf7   :  { %2213 = vrot.lane.b32.xlu0 %v809_v29, %s2743_s1 }
  0xf8   :  { %v2579_v46 = vpop.f32.mrb[14].mxu0  ;;  %v2586_v49 = vpop.f32.mrb[14].mxu1 }
  0xf9   :  { %v1338_v47 = vsub.f32 %v2579_v46, %v3042_v39  ;;  %v1326_v48 = vpop.f32.mrb[15].mxu0  ;;  %2223 = vrot.lane.b32.xlu1 %v1075_v38, %s2744_s19  ;;  %v1425_v51 = vpop.f32.mrb[15].mxu1 }
  0xfa   :  { %v1337_v50 = vsub.f32 %v1326_v48, %v3046_v42 }
  0xfb   :  { %v3060_v52 = vsub.f32 %v1338_v47, %v3044_v41  ;;  %2154 = vrot.lane.b32.xlu0 %v1070_v36, %s2744_s19 }
  0xfc   :  { %v3064_v53 = vsub.f32 %v1337_v50, %v3050_v44  ;;  %v2593_v54 = vpop.f32.mrb[16].mxu0  ;;  %v2600_v62 = vpop.f32.mrb[16].mxu1 }
  0xfd   :  { %v1601_v55 = vsub.f32 %v2586_v49, %v2593_v54  ;;  %v1506_v63 = vpop.f32.mrb[17].mxu0  ;;  %v1603_v0 = vsub.f32 %v2600_v62, %v2586_v49  ;;  %v1591_v2 = vpop.f32.mrb[17].mxu1 }
  0xfe   :  { %v1600_v1 = vsub.f32 %v1425_v51, %v1506_v63  ;;  %v1602_v3 = vsub.f32 %v1591_v2, %v1425_v51 }
  0xff   :  { %2164 = vrot.lane.b32.xlu1 %v1601_v55, %s2742_s0  ;;  %2221 = vrot.lane.b32.xlu0 %v1074_v40, %s2744_s19  ;;  %v1605_v6 = vsub.f32 %v1603_v0, %v2593_v54 }
 0x100   :  { %v2607_v7 = vpop.f32.mrb[18].mxu0  ;;  %v1604_v8 = vsub.f32 %v1602_v3, %v1506_v63 }
 0x101   :  { %v2614_v9 = vpop.f32.mrb[18].mxu1  ;;  %v1690_v10 = vpop.f32.mrb[19].mxu0 }
 0x102   :  { %v1866_v11 = vsub.f32 %v2607_v7, %v2614_v9  ;;  %v1771_v12 = vpop.f32.mrb[19].mxu1 }
 0x103   :  { %2162 = vrot.lane.b32.xlu1 %v1600_v1, %s2742_s0  ;;  %2229 = vrot.lane.b32.xlu0 %v1604_v8, %s2742_s0  ;;  %v1865_v13 = vsub.f32 %v1690_v10, %v1771_v12 }
 0x104   :  { %v2621_v14 = vpop.f32.mrb[20].mxu0 }
 0x105   :  { %v1868_v15 = vsub.f32 %v2621_v14, %v2607_v7  ;;  %v1856_v16 = vpop.f32.mrb[21].mxu0  ;;  %v2628_v17 = vpop.f32.mrb[20].mxu1 }
 0x106   :  { %v1867_v18 = vsub.f32 %v1856_v16, %v1690_v10  ;;  %v1955_v19 = vpop.f32.mrb[21].mxu1 }
 0x107   :  { %v1870_v20 = vsub.f32 %v1868_v15, %v2614_v9  ;;  %2231 = vrot.lane.b32.xlu1 %v1605_v6, %s2742_s0  ;;  %2170 = vrot.lane.b32.xlu0 %v1865_v13, %s2743_s1 }
 0x108   :  { %v1869_v21 = vsub.f32 %v1867_v18, %v1771_v12  ;;  %v2635_v22 = vpop.f32.mrb[22].mxu0 }
 0x109   :  { %v2131_v23 = vsub.f32 %v2628_v17, %v2635_v22  ;;  %v2036_v24 = vpop.f32.mrb[23].mxu0  ;;  %v2642_v25 = vpop.f32.mrb[22].mxu1 }
 0x10a   :  { %v2130_v26 = vsub.f32 %v1955_v19, %v2036_v24  ;;  %v2133_v27 = vsub.f32 %v2642_v25, %v2628_v17  ;;  %v2121_v28 = vpop.f32.mrb[23].mxu1 }
 0x10b   :  { %2172 = vrot.lane.b32.xlu1 %v1866_v11, %s2743_s1  ;;  %2237 = vrot.lane.b32.xlu0 %v1869_v21, %s2743_s1  ;;  %v2132_v29 = vsub.f32 %v2121_v28, %v1955_v19 }
 0x10c   :  { %v2135_v30 = vsub.f32 %v2133_v27, %v2635_v22 }
 0x10d   :  { %v2134_v31 = vsub.f32 %v2132_v29, %v2036_v24 }
 0x10f   :  { %2239 = vrot.lane.b32.xlu1 %v1870_v20, %s2743_s1  ;;  %2178 = vrot.lane.b32.xlu0 %v2130_v26, %s2744_s19 }
 0x113   :  { %2180 = vrot.lane.b32.xlu1 %v2131_v23, %s2744_s19  ;;  %2245 = vrot.lane.b32.xlu0 %v2134_v31, %s2744_s19 }
 0x117   :  { %2247 = vrot.lane.b32.xlu1 %v2135_v30, %s2744_s19 }
 0x159   :  { %v2141_v32 = vpop.permute.xlu0 %2140 }
 0x15a   :  { %v2186_v40 = vsel %vm2184_vm1, %v276_v59, %v2141_v32 }
 0x15b   :  { %v2208_v33 = vpop.permute.xlu1 %2207 }
 0x15c   :  { %v2252_v50 = vsel %vm2184_vm1, %v3030_v4, %v2208_v33 }
 0x15d   :  { %v2139_v34 = vpop.permute.xlu0 %2138 }
 0x15e   :  { %v2185_v56 = vsel %vm2184_vm1, %v275_v61, %v2139_v34 }
 0x15f   :  { %v2149_v35 = vpop.permute.xlu1 %2148 }
 0x160   :  { %v2189_v46 = vsel %vm2187_vm2, %v2186_v40, %v2149_v35 }
 0x161   :  { %v2206_v36 = vpop.permute.xlu0 %2205 }
 0x162   :  { %v2251_v58 = vsel %vm2184_vm1, %v3033_v5, %v2206_v36 }
 0x163   :  { %v2216_v37 = vpop.permute.xlu1 %2215 }
 0x164   :  { %v2254_v57 = vsel %vm2187_vm2, %v2252_v50, %v2216_v37 }
 0x165   :  { %v2147_v38 = vpop.permute.xlu0 %2146 }
 0x166   :  { %v2188_v51 = vsel %vm2187_vm2, %v2185_v56, %v2147_v38 }
 0x167   :  { %v2157_v47 = vpop.permute.xlu1 %2156 }
 0x168   :  { %v2192_v48 = vsel %vm2190_vm3, %v2189_v46, %v2157_v47 }
 0x169   :  { %v2214_v49 = vpop.permute.xlu0 %2213  ;;  %2201 = vst [vmem:[%s3147_s4 + $0x10] sm:$0xff] %v2192_v48 }
 0x16a   :  { %v2253_v60 = vsel %vm2187_vm2, %v2251_v58, %v2214_v49 }
 0x16b   :  { %v2224_v59 = vpop.permute.xlu1 %2223 }
 0x16c   :  { %v2256_v54 = vsel %vm2190_vm3, %v2254_v57, %v2224_v59 }
 0x16d   :  { %v2155_v55 = vpop.permute.xlu0 %2154  ;;  %2265 = vst [vmem:[%s3148_s5 + $0x10] sm:$0xff] %v2256_v54 }
 0x16e   :  { %v2191_v62 = vsel %vm2190_vm3, %v2188_v51, %v2155_v55 }
 0x16f   :  { %2199 = vst [vmem:[%s3147_s4] sm:$0xff] %v2191_v62 }
 0x171   :  { %v2165_v61 = vpop.permute.xlu1 %2164  ;;  %v2222_v4 = vpop.permute.xlu0 %2221 }
 0x172   :  { %v2255_v63 = vsel %vm2190_vm3, %v2253_v60, %v2222_v4  ;;  %v2194_v12 = vsel %vm2184_vm1, %v1336_v43, %v2165_v61 }
 0x173   :  { %2263 = vst [vmem:[%s3148_s5] sm:$0xff] %v2255_v63 }
 0x175   :  { %v2163_v0 = vpop.permute.xlu1 %2162  ;;  %v2230_v1 = vpop.permute.xlu0 %2229 }
 0x176   :  { %v2193_v5 = vsel %vm2184_vm1, %v1335_v45, %v2163_v0  ;;  %v2257_v42 = vsel %vm2184_vm1, %v3064_v53, %v2230_v1 }
 0x179   :  { %v2232_v2 = vpop.permute.xlu1 %2231  ;;  %v2171_v3 = vpop.permute.xlu0 %2170 }
 0x17a   :  { %v2195_v8 = vsel %vm2187_vm2, %v2193_v5, %v2171_v3  ;;  %v2258_v39 = vsel %vm2184_vm1, %v3060_v52, %v2232_v2 }
 0x17d   :  { %v2173_v6 = vpop.permute.xlu1 %2172  ;;  %v2238_v7 = vpop.permute.xlu0 %2237 }
 0x17e   :  { %v2196_v44 = vsel %vm2187_vm2, %v2194_v12, %v2173_v6  ;;  %v2259_v45 = vsel %vm2187_vm2, %v2257_v42, %v2238_v7 }
 0x181   :  { %v2240_v9 = vpop.permute.xlu1 %2239  ;;  %v2179_v10 = vpop.permute.xlu0 %2178 }
 0x182   :  { %v2197_v11 = vsel %vm2190_vm3, %v2195_v8, %v2179_v10  ;;  %v2260_v41 = vsel %vm2187_vm2, %v2258_v39, %v2240_v9 }
 0x183   :  { %2200 = vst [vmem:[%s3147_s4 + $0x8] sm:$0xff] %v2197_v11 }
 0x185   :  { %v2181_v13 = vpop.permute.xlu1 %2180  ;;  %v2246_v14 = vpop.permute.xlu0 %2245 }
 0x186   :  { %v2198_v15 = vsel %vm2190_vm3, %v2196_v44, %v2181_v13  ;;  %v2261_v16 = vsel %vm2190_vm3, %v2259_v45, %v2246_v14 }
 0x187   :  { %2202 = vst [vmem:[%s3147_s4 + $0x18] sm:$0xff] %v2198_v15  ;;  %2264 = vst [vmem:[%s3148_s5 + $0x8] sm:$0xff] %v2261_v16 }
 0x189   :  { %v2248_v43 = vpop.permute.xlu1 %2247 }
 0x18a   :  { %v2262_v53 = vsel %vm2190_vm3, %v2260_v41, %v2248_v43 }
 0x18b   :  { %2266 = vst [vmem:[%s3148_s5 + $0x18] sm:$0xff] %v2262_v53 }

</bundles_post_ra>
